<compile_context>
chip_gen: v7x
topology: tpu7x:2x2x1
jax: 0.10.0
libtpu: 0.0.40
codegen_flags: <defaults>
</compile_context>

<pallas_src>
import jax
import jax.numpy as jnp
from jax import lax
from jax.experimental import pallas as pl
from jax.experimental.pallas import tpu as pltpu


def _round_up(x, m):
    return ((x + m - 1) // m) * m


def _cdiv(a, b):
    return -(-a // b)


def _fit_tile(per_lane_bytes, max_tile, cap, budget):
    """Largest lane-tile (multiple of 128, <= cap, <= max_tile) under budget."""
    t = min(max_tile, cap)
    t = max(128, (t // 128) * 128)
    while t > 128 and per_lane_bytes * t > budget:
        t -= 128
    return t


# ----------------------------------------------------------------------------
# Pallas kernels
# ----------------------------------------------------------------------------
def make_decode_kernel(stride_w, stride_h, scaled_anchors):
    sw = float(stride_w)
    sh = float(stride_h)
    n_anchors = len(scaled_anchors)

    def kernel(gxy_ref, pred_ref, out_ref):
        # Anchor (w, h) chosen from the compile-time table by the anchor axis.
        ai = pl.program_id(0)
        aw = jnp.float32(scaled_anchors[0][0])
        ah = jnp.float32(scaled_anchors[0][1])
        for k in range(1, n_anchors):
            aw = jnp.where(ai == k, jnp.float32(scaled_anchors[k][0]), aw)
            ah = jnp.where(ai == k, jnp.float32(scaled_anchors[k][1]), ah)

        p = pred_ref[...]                       # (bs, nattr, T)
        g = gxy_ref[...]                        # (2, T): row0 grid_x, row1 grid_y
        t_lanes = p.shape[-1]

        # Per-row (x vs y / w vs h) scale vectors, built in-kernel.
        is_x = lax.broadcasted_iota(jnp.int32, (1, 2, t_lanes), 1) == 0
        stride_xy = jnp.where(is_x, sw, sh)                 # (1, 2, T)
        anc_wh = jnp.where(is_x, aw * sw, ah * sh)          # (1, 2, T)

        sig = 1.0 / (1.0 + jnp.exp(-p))                     # exact sigmoid
        out_ref[:, 0:2, :] = (sig[:, 0:2, :] + g[None, :, :]) * stride_xy
        out_ref[:, 2:4, :] = jnp.exp(p[:, 2:4, :]) * anc_wh
        out_ref[:, 4:, :] = sig[:, 4:, :]                   # conf + classes

    return kernel


def make_loss_kernel(nattr, n_rows):
    """Accumulates per-attribute / per-lane partial sums into the output block.

    Output block rows (nattr + 3, tile):
      0..nattr-1 : sum over cells of (bce|mse)(pred, tgt) * mask   per attribute
      nattr      : sum of softplus(conf) * noobj    (conf-noobj BCE, shared sp)
      nattr + 1  : count(mask)
      nattr + 2  : count(noobj)
    """
    a = nattr

    def kernel(pred_ref, tgt_ref, aux_ref, out_ref):
        @pl.when(pl.program_id(1) == 0)
        def _init():
            out_ref[...] = jnp.zeros_like(out_ref)

        t_lanes = pred_ref.shape[-1]
        row = lax.broadcasted_iota(jnp.int32, (a, t_lanes), 0)
        is_wh = (row >= 2) & (row < 4)                      # MSE rows (w, h)

        acc_attr = jnp.zeros((a, t_lanes), jnp.float32)
        acc_noobj = jnp.zeros((1, t_lanes), jnp.float32)
        acc_cnt = jnp.zeros((1, t_lanes), jnp.float32)
        acc_cntno = jnp.zeros((1, t_lanes), jnp.float32)

        # Static unrolled loop over the (bs*A) rows of the block; each
        # iteration works on dense (nattr, tile) planes.
        for r in range(n_rows):
            p = pred_ref[r]                                 # (nattr, T)
            t = tgt_ref[r]                                  # (nattr, T)
            aux = aux_ref[r]                                # (2, T)
            m = aux[0:1, :]
            nm = aux[1:2, :]

            # softplus(p) shared between every BCE term (incl. conf-noobj).
            sp = jnp.maximum(p, 0.0) + jnp.log(1.0 + jnp.exp(-jnp.abs(p)))
            bce = sp - p * t
            mse = jnp.square(p - t)
            acc_attr = acc_attr + jnp.where(is_wh, mse, bce) * m
            acc_noobj = acc_noobj + sp[4:5, :] * nm
            acc_cnt = acc_cnt + m
            acc_cntno = acc_cntno + nm

        out_ref[0:a, :] += acc_attr
        out_ref[a:a + 1, :] += acc_noobj
        out_ref[a + 1:a + 2, :] += acc_cnt
        out_ref[a + 2:a + 3, :] += acc_cntno

    return kernel


# ----------------------------------------------------------------------------
# Plain-JAX glue: target assignment (YOLOLoss.get_target)
# ----------------------------------------------------------------------------
def get_target_jax(bboxes, cats, scaled_anchors, in_w, in_h,
                   ignore_threshold, num_classes):
    """bboxes: (bs, NB, 4) normalized cx,cy,w,h ; cats: (bs, NB) int32.

    Returns tcls directly in (bs, A, C, H, W) layout (no later moveaxis)."""
    bs, nb, _ = bboxes.shape
    a = scaled_anchors.shape[0]
    mask = jnp.zeros((bs, a, in_h, in_w), jnp.float32)
    noobj = jnp.ones((bs, a, in_h, in_w), jnp.float32)
    tx = jnp.zeros((bs, a, in_h, in_w), jnp.float32)
    ty = jnp.zeros_like(tx)
    tw = jnp.zeros_like(tx)
    th = jnp.zeros_like(tx)
    tconf = jnp.zeros_like(tx)
    tcls = jnp.zeros((bs, a, num_classes, in_h, in_w), jnp.float32)

    aw = scaled_anchors[:, 0]
    ah = scaled_anchors[:, 1]

    for b in range(bs):
        gx = jnp.clip(bboxes[b, :, 0] * in_w, 0.0, in_w - 1e-4)
        gy = jnp.clip(bboxes[b, :, 1] * in_h, 0.0, in_h - 1e-4)
        gw = bboxes[b, :, 2] * in_w
        gh = bboxes[b, :, 3] * in_h
        gi = gx.astype(jnp.int32)
        gj = gy.astype(jnp.int32)

        # IoU of [0,0,gw,gh] vs [0,0,aw,ah]  (xyxy, torchvision box_iou)
        inter = (jnp.minimum(gw[:, None], aw[None, :])
                 * jnp.minimum(gh[:, None], ah[None, :]))
        union = gw[:, None] * gh[:, None] + aw[None, :] * ah[None, :] - inter
        ious = inter / union                               # (NB, A)
        best_n = jnp.argmax(ious, axis=1)                  # (NB,)

        # noobj_mask[b, iou>thr, gj, gi] = 0 per ground truth
        over = ious > ignore_threshold                     # (NB, A)
        cell = jnp.zeros((nb, in_h, in_w), bool).at[
            jnp.arange(nb), gj, gi].set(True)              # (NB, H, W)
        zero_upd = jnp.any(over[:, :, None, None] & cell[:, None, :, :], axis=0)
        nb_b = jnp.where(zero_upd, 0.0, noobj[b])
        nb_b = nb_b.at[best_n, gj, gi].set(0.0)
        noobj = noobj.at[b].set(nb_b)

        mask = mask.at[b, best_n, gj, gi].set(1.0)
        tx = tx.at[b, best_n, gj, gi].set(gx - gi.astype(jnp.float32))
        ty = ty.at[b, best_n, gj, gi].set(gy - gj.astype(jnp.float32))
        tw = tw.at[b, best_n, gj, gi].set(jnp.log(gw / aw[best_n] + 1e-16))
        th = th.at[b, best_n, gj, gi].set(jnp.log(gh / ah[best_n] + 1e-16))
        tconf = tconf.at[b, best_n, gj, gi].set(1.0)
        tcls = tcls.at[b, best_n, cats[b], gj, gi].set(1.0)

    return mask, noobj, tx, ty, tw, th, tconf, tcls


# ----------------------------------------------------------------------------
# Wrappers
# ----------------------------------------------------------------------------
def yolo_decode(inp, anchors, num_classes, img_size,
                max_tile=4096, vmem_budget=8 << 20):
    """Inference branch (targets=None).  inp: (bs, A*(5+C), H, W) f32."""
    bs, _, in_h, in_w = inp.shape
    a = len(anchors)
    nattr = 5 + num_classes
    stride_h = img_size / in_h
    stride_w = img_size / in_w
    scaled = [(w / stride_w, h / stride_h) for (w, h) in anchors]
    hw = in_h * in_w

    # ~8 MiB working-set budget: double-buffered in+out blocks + intermediates.
    per_lane = 4 * bs * nattr * (2 * 2 + 3)
    tile = _fit_tile(per_lane, max_tile, _round_up(hw, 128), vmem_budget)
    hw_pad = _round_up(hw, tile)

    # (bs, A*(5+C), H, W) -> (bs, A, 5+C, HW)  (pure reshape, no copy).
    pred = inp.reshape(bs, a, nattr, hw)
    if hw_pad != hw:
        pred = jnp.pad(pred, ((0, 0), (0, 0), (0, 0), (0, hw_pad - hw)))

    # Tiny per-cell grid-offset table (2, HW): row0 = grid_x, row1 = grid_y.
    idx = jnp.arange(hw_pad, dtype=jnp.int32)
    gxy = jnp.stack([(idx % in_w).astype(jnp.float32),
                     (idx // in_w).astype(jnp.float32)], axis=0)

    kernel = make_decode_kernel(stride_w, stride_h, scaled)
    out = pl.pallas_call(
        kernel,
        out_shape=jax.ShapeDtypeStruct((bs, a, nattr, hw_pad), jnp.float32),
        grid=(a, hw_pad // tile),
        in_specs=[
            pl.BlockSpec((2, tile), lambda ai, t: (0, t)),
            pl.BlockSpec((bs, None, nattr, tile), lambda ai, t: (0, ai, 0, t)),
        ],
        out_specs=pl.BlockSpec((bs, None, nattr, tile),
                               lambda ai, t: (0, ai, 0, t)),
        compiler_params=pltpu.CompilerParams(
            dimension_semantics=("parallel", "parallel")),
    )(gxy, pred)

    out = out[:, :, :, :hw]                            # (bs, A, 5+C, HW)
    # (bs, A, 5+C, HW) -> (bs, A*HW, 5+C)  (matches torch .view(bs, -1, attrs)).
    # TODO(synk): drop this transpose if downstream can consume attribute-major.
    return jnp.transpose(out, (0, 1, 3, 2)).reshape(bs, a * hw, nattr)


def yolo_loss(inp, bboxes, cats, anchors, num_classes, img_size,
              ignore_threshold, lambda_xy, lambda_wh, lambda_conf,
              lambda_no_conf, lambda_cls, max_tile=4096, num_core_splits=2,
              vmem_budget=8 << 20):
    """Training branch.  Returns (loss, lx, ly, lw, lh, lconf, lcls)."""
    bs, _, in_h, in_w = inp.shape
    a = len(anchors)
    nattr = 5 + num_classes
    stride_h = img_size / in_h
    stride_w = img_size / in_w
    scaled = jnp.array([(w / stride_w, h / stride_h) for (w, h) in anchors],
                       jnp.float32)
    hw = in_h * in_w
    r_rows = bs * a
    racc = nattr + 3

    mask, noobj, tx, ty, tw, th, tconf, tcls = get_target_jax(
        bboxes, cats, scaled, in_w, in_h, ignore_threshold, num_classes)

    # Prediction: pure reshape, no transpose/copy in HBM.
    pred = inp.reshape(r_rows, nattr, hw)
    # Freshly built target planes packed once into a matching slab.
    tgt = jnp.concatenate(
        [jnp.stack([tx, ty, tw, th, tconf], axis=2), tcls],
        axis=2).reshape(r_rows, nattr, hw)
    aux = jnp.stack([mask, noobj], axis=2).reshape(r_rows, 2, hw)

    nc = num_core_splits
    hw128 = _round_up(hw, 128)
    tile_cap = _round_up(_cdiv(hw128, nc), 128)
    per_lane = 4 * (2 * r_rows * (2 * nattr + 2) + racc + 10 * nattr)
    tile = _fit_tile(per_lane, max_tile, tile_cap, vmem_budget)
    k_steps = _cdiv(hw128, nc * tile)
    hw_pad = nc * k_steps * tile

    if hw_pad != hw:   # zero pad: mask/noobj pad to 0 -> no contribution
        padw = ((0, 0), (0, 0), (0, hw_pad - hw))
        pred = jnp.pad(pred, padw)
        tgt = jnp.pad(tgt, padw)
        aux = jnp.pad(aux, padw)

    kernel = make_loss_kernel(nattr, r_rows)
    out = pl.pallas_call(
        kernel,
        out_shape=jax.ShapeDtypeStruct((nc, racc, tile), jnp.float32),
        grid=(nc, k_steps),
        in_specs=[
            pl.BlockSpec((r_rows, nattr, tile),
                         lambda c, k: (0, 0, c * k_steps + k)),
            pl.BlockSpec((r_rows, nattr, tile),
                         lambda c, k: (0, 0, c * k_steps + k)),
            pl.BlockSpec((r_rows, 2, tile),
                         lambda c, k: (0, 0, c * k_steps + k)),
        ],
        out_specs=pl.BlockSpec((None, racc, tile), lambda c, k: (c, 0, 0)),
        compiler_params=pltpu.CompilerParams(
            dimension_semantics=("parallel", "arbitrary")),
    )(pred, tgt, aux)

    # Final cross-lane / cross-core reduce + lambda/normalizer combine (tiny).
    sums = out.sum(axis=(0, 2))                        # (nattr + 3,)
    # Guard against empty mask (reference would NaN; clamp instead).
    cnt = jnp.maximum(sums[nattr + 1], 1.0)
    cnt_no = jnp.maximum(sums[nattr + 2], 1.0)
    lx = sums[0] / cnt
    ly = sums[1] / cnt
    lw = sums[2] / cnt
    lh = sums[3] / cnt
    lconf = (lambda_conf * (sums[4] / cnt)
             + lambda_no_conf * (sums[nattr] / cnt_no))
    lcls = jnp.sum(sums[5:nattr]) / (cnt * num_classes)
    total = (lambda_xy * (lx + ly) + lambda_wh * (lw + lh)
             + lconf + lambda_cls * lcls)
    return jnp.stack([total, lx, ly, lw, lh, lconf, lcls])


# ----------------------------------------------------------------------------
# Pure-JAX references (for correctness checks in the demo)
# ----------------------------------------------------------------------------
def yolo_decode_ref(inp, anchors, num_classes, img_size):
    bs, _, in_h, in_w = inp.shape
    a = len(anchors)
    nattr = 5 + num_classes
    sh = img_size / in_h
    sw = img_size / in_w
    pred = jnp.transpose(inp.reshape(bs, a, nattr, in_h, in_w), (0, 1, 3, 4, 2))
    sig = jax.nn.sigmoid
    gx = jnp.arange(in_w, dtype=jnp.float32)[None, None, None, :]
    gy = jnp.arange(in_h, dtype=jnp.float32)[None, None, :, None]
    aw = jnp.array([w / sw for (w, h) in anchors], jnp.float32)[None, :, None, None]
    ah = jnp.array([h / sh for (w, h) in anchors], jnp.float32)[None, :, None, None]
    bx = (sig(pred[..., 0]) + gx) * sw
    by = (sig(pred[..., 1]) + gy) * sh
    bw = jnp.exp(pred[..., 2]) * aw * sw
    bh = jnp.exp(pred[..., 3]) * ah * sh
    conf = sig(pred[..., 4])
    cls = sig(pred[..., 5:])
    out = jnp.concatenate([bx[..., None], by[..., None], bw[..., None],
                           bh[..., None], conf[..., None], cls], axis=-1)
    return out.reshape(bs, a * in_h * in_w, nattr)


def yolo_loss_ref(inp, bboxes, cats, anchors, num_classes, img_size,
                  ignore_threshold, l_xy, l_wh, l_conf, l_noconf, l_cls):
    bs, _, in_h, in_w = inp.shape
    a = len(anchors)
    nattr = 5 + num_classes
    sh = img_size / in_h
    sw = img_size / in_w
    scaled = jnp.array([(w / sw, h / sh) for (w, h) in anchors], jnp.float32)
    pred = jnp.transpose(inp.reshape(bs, a, nattr, in_h, in_w), (0, 1, 3, 4, 2))
    x, y = pred[..., 0], pred[..., 1]
    w, h = pred[..., 2], pred[..., 3]
    conf, cls = pred[..., 4], pred[..., 5:]
    mask, noobj, tx, ty, tw, th, tconf, tcls = get_target_jax(
        bboxes, cats, scaled, in_w, in_h, ignore_threshold, num_classes)
    tcls = jnp.moveaxis(tcls, 2, -1)                   # (bs, A, H, W, C)

    def bce(p, t):
        return jnp.maximum(p, 0.0) - p * t + jnp.log(1.0 + jnp.exp(-jnp.abs(p)))

    cnt = jnp.maximum(mask.sum(), 1.0)
    cnt_no = jnp.maximum(noobj.sum(), 1.0)
    lx = (bce(x, tx) * mask).sum() / cnt
    ly = (bce(y, ty) * mask).sum() / cnt
    lw = ((w - tw) ** 2 * mask).sum() / cnt
    lh = ((h - th) ** 2 * mask).sum() / cnt
    lco = (l_conf * (bce(conf, tconf) * mask).sum() / cnt
           + l_noconf * (bce(conf, jnp.zeros_like(conf)) * noobj).sum() / cnt_no)
    lcl = (bce(cls, tcls) * mask[..., None]).sum() / (cnt * num_classes)
    total = l_xy * (lx + ly) + l_wh * (lw + lh) + lco + l_cls * lcl
    return jnp.stack([total, lx, ly, lw, lh, lco, lcl])


# ----------------------------------------------------------------------------
# Demo
# ----------------------------------------------------------------------------
if __name__ == "__main__":
    cfg = {
        "anchors": [
            [(116, 90), (156, 198), (373, 326)],
            [(30, 61), (62, 45), (59, 119)],
            [(10, 13), (16, 30), (33, 23)],
        ],
        "classes": 4,
        "img_size": 64,
        "ignore_threshold": 0.5,
        "lambda_xy": 2.5,
        "lambda_wh": 2.5,
        "lambda_conf": 1.0,
        "lambda_no_conf": 0.5,
        "lambda_cls": 1.0,
    }
    head = 2
    anchors = cfg["anchors"][head]
    num_classes = cfg["classes"]
    num_anchors = len(anchors)
    bbox_attrs = 5 + num_classes

    bs, in_h, in_w = 2, 16, 16
    num_boxes = 3

    key = jax.random.PRNGKey(0)
    k1, k2, k3, k4 = jax.random.split(key, 4)
    # Network head output (NCHW, like the PyTorch module expects)
    x = jax.random.normal(k1, (bs, num_anchors * bbox_attrs, in_h, in_w),
                          dtype=jnp.float32)
    # Synthetic ground-truth targets: normalized cx, cy, w, h + class ids
    centers = jax.random.uniform(k2, (bs, num_boxes, 2), minval=0.1, maxval=0.9)
    sizes = jax.random.uniform(k3, (bs, num_boxes, 2), minval=0.05, maxval=0.3)
    bboxes = jnp.concatenate([centers, sizes], axis=-1).astype(jnp.float32)
    cats = jax.random.randint(k4, (bs, num_boxes), 0, num_classes,
                              dtype=jnp.int32)

    # Inference branch (targets=None): decoded detections
    detections = yolo_decode(x, anchors, num_classes, cfg["img_size"])
    detections = jax.block_until_ready(detections)
    assert detections.shape == (bs, num_anchors * in_h * in_w, bbox_attrs)
    det_ref = yolo_decode_ref(x, anchors, num_classes, cfg["img_size"])
    assert bool(jnp.allclose(detections, det_ref, rtol=1e-3, atol=1e-3))

    # Training branch: losses
    losses = yolo_loss(
        x, bboxes, cats, anchors, num_classes, cfg["img_size"],
        cfg["ignore_threshold"], cfg["lambda_xy"], cfg["lambda_wh"],
        cfg["lambda_conf"], cfg["lambda_no_conf"], cfg["lambda_cls"])
    losses = jax.block_until_ready(losses)
    assert losses.shape == (7,)
    assert bool(jnp.all(jnp.isfinite(losses)))
    losses_ref = yolo_loss_ref(
        x, bboxes, cats, anchors, num_classes, cfg["img_size"],
        cfg["ignore_threshold"], cfg["lambda_xy"], cfg["lambda_wh"],
        cfg["lambda_conf"], cfg["lambda_no_conf"], cfg["lambda_cls"])
    assert bool(jnp.allclose(losses, losses_ref, rtol=1e-3, atol=1e-4))

    print("KERNEL_OK")
</pallas_src>

<mosaic_0001>
module attributes {stable_mosaic.version = 11 : i64} {
  func.func @kernel(%arg0: i32, %arg1: i32, %arg2: memref<2x256xf32, #tpu.memory_space<vmem>>, %arg3: memref<2x1x9x256xf32, #tpu.memory_space<vmem>>, %arg4: memref<2x1x9x256xf32, #tpu.memory_space<vmem>>) attributes {dimension_semantics = [#tpu.dimension_semantics<parallel>, #tpu.dimension_semantics<parallel>], iteration_bounds = array<i64: 3, 1>, scalar_prefetch = 0 : i64, scratch_operands = 0 : i64, tpu.core_type = #tpu.core_type<tc>, window_params = [{transform_indices = @transform_0, window_bounds = array<i64: 2, 256>}, {transform_indices = @transform_1, window_bounds = array<i64: 2, 1, 9, 256>}, {transform_indices = @transform_2, window_bounds = array<i64: 2, 1, 9, 256>}]} {
    %c1_i32 = arith.constant 1 : i32
    %0 = arith.cmpi eq, %arg0, %c1_i32 : i32
    %cst = arith.constant 4.000000e+00 : f32
    %cst_0 = arith.constant 2.500000e+00 : f32
    %1 = arith.select %0, %cst, %cst_0 : f32
    %c1_i32_1 = arith.constant 1 : i32
    %2 = arith.cmpi eq, %arg0, %c1_i32_1 : i32
    %cst_2 = arith.constant 7.500000e+00 : f32
    %cst_3 = arith.constant 3.250000e+00 : f32
    %3 = arith.select %2, %cst_2, %cst_3 : f32
    %c2_i32 = arith.constant 2 : i32
    %4 = arith.cmpi eq, %arg0, %c2_i32 : i32
    %cst_4 = arith.constant 8.250000e+00 : f32
    %5 = arith.select %4, %cst_4, %1 : f32
    %c2_i32_5 = arith.constant 2 : i32
    %6 = arith.cmpi eq, %arg0, %c2_i32_5 : i32
    %cst_6 = arith.constant 5.750000e+00 : f32
    %7 = arith.select %6, %cst_6, %3 : f32
    %c0 = arith.constant 0 : index
    %c0_7 = arith.constant 0 : index
    %c0_8 = arith.constant 0 : index
    %c0_9 = arith.constant 0 : index
    %8 = vector.load %arg3[%c0, %c0_7, %c0_8, %c0_9] : memref<2x1x9x256xf32, #tpu.memory_space<vmem>>, vector<2x1x9x256xf32>
    %9 = vector.shape_cast %8 : vector<2x1x9x256xf32> to vector<2x9x256xf32>
    %c0_10 = arith.constant 0 : index
    %c0_11 = arith.constant 0 : index
    %10 = vector.load %arg2[%c0_10, %c0_11] : memref<2x256xf32, #tpu.memory_space<vmem>>, vector<2x256xf32>
    %11 = tpu.iota {dimensions = array<i32: 1>} : vector<1x2x256xi32>
    %c0_i32 = arith.constant 0 : i32
    %12 = vector.broadcast %c0_i32 : i32 to vector<1x2x256xi32>
    %13 = arith.cmpi eq, %11, %12 : vector<1x2x256xi32>
    %cst_12 = arith.constant 4.000000e+00 : f32
    %cst_13 = arith.constant 4.000000e+00 : f32
    %14 = vector.broadcast %cst_12 : f32 to vector<1x2x256xf32>
    %15 = vector.broadcast %cst_13 : f32 to vector<1x2x256xf32>
    %16 = arith.select %13, %14, %15 : vector<1x2x256xi1>, vector<1x2x256xf32>
    %cst_14 = arith.constant 4.000000e+00 : f32
    %17 = arith.mulf %5, %cst_14 : f32
    %cst_15 = arith.constant 4.000000e+00 : f32
    %18 = arith.mulf %7, %cst_15 : f32
    %19 = vector.broadcast %17 : f32 to vector<1x2x256xf32>
    %20 = vector.broadcast %18 : f32 to vector<1x2x256xf32>
    %21 = arith.select %13, %19, %20 : vector<1x2x256xi1>, vector<1x2x256xf32>
    %cst_16 = arith.constant 0.000000e+00 : f32
    %22 = vector.broadcast %cst_16 : f32 to vector<2x9x256xf32>
    %23 = arith.subf %22, %9 : vector<2x9x256xf32>
    %24 = math.exp %23 : vector<2x9x256xf32>
    %cst_17 = arith.constant 1.000000e+00 : f32
    %25 = vector.broadcast %cst_17 : f32 to vector<2x9x256xf32>
    %26 = arith.addf %25, %24 : vector<2x9x256xf32>
    %cst_18 = arith.constant 1.000000e+00 : f32
    %27 = vector.broadcast %cst_18 : f32 to vector<2x9x256xf32>
    %28 = arith.divf %27, %26 : vector<2x9x256xf32>
    %29 = vector.extract_strided_slice %28 {offsets = [0, 0, 0], sizes = [2, 2, 256], strides = [1, 1, 1]} : vector<2x9x256xf32> to vector<2x2x256xf32>
    %30 = vector.shape_cast %10 : vector<2x256xf32> to vector<1x2x256xf32>
    %31 = vector.broadcast %30 : vector<1x2x256xf32> to vector<2x2x256xf32>
    %32 = arith.addf %29, %31 : vector<2x2x256xf32>
    %33 = vector.broadcast %16 : vector<1x2x256xf32> to vector<2x2x256xf32>
    %34 = arith.mulf %32, %33 : vector<2x2x256xf32>
    %c0_19 = arith.constant 0 : index
    %c0_20 = arith.constant 0 : index
    %c0_21 = arith.constant 0 : index
    %c0_22 = arith.constant 0 : index
    %35 = vector.load %arg4[%c0_19, %c0_20, %c0_21, %c0_22] : memref<2x1x9x256xf32, #tpu.memory_space<vmem>>, vector<2x1x2x256xf32>
    %36 = vector.shape_cast %35 : vector<2x1x2x256xf32> to vector<2x2x256xf32>
    %37 = vector.shape_cast %34 : vector<2x2x256xf32> to vector<2x1x2x256xf32>
    tpu.vector_store %arg4[%c0_19, %c0_20, %c0_21, %c0_22], %37 {strides = array<i32>} : memref<2x1x9x256xf32, #tpu.memory_space<vmem>>, vector<2x1x2x256xf32>,
    %38 = vector.extract_strided_slice %9 {offsets = [0, 2, 0], sizes = [2, 2, 256], strides = [1, 1, 1]} : vector<2x9x256xf32> to vector<2x2x256xf32>
    %39 = math.exp %38 : vector<2x2x256xf32>
    %40 = vector.broadcast %21 : vector<1x2x256xf32> to vector<2x2x256xf32>
    %41 = arith.mulf %39, %40 : vector<2x2x256xf32>
    %c0_23 = arith.constant 0 : index
    %c0_24 = arith.constant 0 : index
    %c2 = arith.constant 2 : index
    %c0_25 = arith.constant 0 : index
    %42 = vector.load %arg4[%c0_23, %c0_24, %c2, %c0_25] : memref<2x1x9x256xf32, #tpu.memory_space<vmem>>, vector<2x1x2x256xf32>
    %43 = vector.shape_cast %42 : vector<2x1x2x256xf32> to vector<2x2x256xf32>
    %44 = vector.shape_cast %41 : vector<2x2x256xf32> to vector<2x1x2x256xf32>
    tpu.vector_store %arg4[%c0_23, %c0_24, %c2, %c0_25], %44 {strides = array<i32>} : memref<2x1x9x256xf32, #tpu.memory_space<vmem>>, vector<2x1x2x256xf32>,
    %45 = vector.extract_strided_slice %28 {offsets = [0, 4, 0], sizes = [2, 5, 256], strides = [1, 1, 1]} : vector<2x9x256xf32> to vector<2x5x256xf32>
    %c0_26 = arith.constant 0 : index
    %c0_27 = arith.constant 0 : index
    %c4 = arith.constant 4 : index
    %c0_28 = arith.constant 0 : index
    %46 = vector.load %arg4[%c0_26, %c0_27, %c4, %c0_28] : memref<2x1x9x256xf32, #tpu.memory_space<vmem>>, vector<2x1x5x256xf32>
    %47 = vector.shape_cast %46 : vector<2x1x5x256xf32> to vector<2x5x256xf32>
    %48 = vector.shape_cast %45 : vector<2x5x256xf32> to vector<2x1x5x256xf32>
    tpu.vector_store %arg4[%c0_26, %c0_27, %c4, %c0_28], %48 {strides = array<i32>} : memref<2x1x9x256xf32, #tpu.memory_space<vmem>>, vector<2x1x5x256xf32>,
    return
  }
  func.func @transform_0(%arg0: i32, %arg1: i32) -> (i32, i32) {
    %c0_i32 = arith.constant 0 : i32
    %c0_i32_0 = arith.constant 0 : i32
    return %c0_i32, %arg1 : i32, i32
  }
  func.func @transform_1(%arg0: i32, %arg1: i32) -> (i32, i32, i32, i32) {
    %c0_i32 = arith.constant 0 : i32
    %c0_i32_0 = arith.constant 0 : i32
    %c0_i32_1 = arith.constant 0 : i32
    return %c0_i32, %arg0, %c0_i32_0, %arg1 : i32, i32, i32, i32
  }
  func.func @transform_2(%arg0: i32, %arg1: i32) -> (i32, i32, i32, i32) {
    %c0_i32 = arith.constant 0 : i32
    %c0_i32_0 = arith.constant 0 : i32
    %c0_i32_1 = arith.constant 0 : i32
    return %c0_i32, %arg0, %c0_i32_0, %arg1 : i32, i32, i32, i32
  }
}

</mosaic_0001>

<bundles_post_ra>
// kernel: tpu_custom_call.1
= control target key start
LH: loop header
LB: loop body
LE: loop exit
PB: predicated region body
PF: predicated region fallthrough
CT: control target
= control target key end

     0   :  { %s618_s9 = smov 0   ;;  %s620_s10 = smov 0   ;;  %s739_s0 = inlined_call_operand.vmem [shape: f32[2,256], index: 0, kind: input, shape index: {}]   ;;  %s740_s1 = inlined_call_operand.vmem [shape: f32[2,3,9,256], index: 1, kind: input, shape index: {}]   ;;  %s741_s2 = inlined_call_operand.vmem [shape: f32[2,3,9,256], index: 2, kind: output, shape index: {}]  }
   0x1   :  { %s622_s11 = smov 0   ;;  %s624_s12 = smov 0  }
   0x2   :  { %s626_s13 = smov 0  }
   0x3 LB: > { %s24_s14 = sadd.s32 1, %s597_s12  ;;  %s464_s15 = sadd.s32 4294967295, %s601_s13   ;;  %s601_s13 = sphi %s626_s13, %s12_s13   ;;  %s597_s12 = sphi %s624_s12, %s746_s12   ;;  %s593_s11 = sphi %s622_s11, %s745_s11   ;;  %s589_s10 = sphi %s620_s10, %s744_s10   ;;  %s585_s9 = sphi %s618_s9, %s743_s9  }
   0x4   : > { %p26_p0 = scmp.ge.s32.totalorder %s24_s14, 3  ;;  %p66_p1 = scmp.ne.s32.totalorder %s589_s10, %s585_s9 }
   0x5   : > { %p67_p2 = scmp.eq.s32.totalorder %s601_s13, 0  ;;  %p98_p4 = scmp.eq.s32.totalorder %s464_s15, 2 }
   0x6   : > { %s748_s14 = smov (%p26_p0, %s24_s14), 0  ;;  %s59_s17 = sadd.s32 1, %s589_s10 }
   0x7   : > { %p68_p3 = por %p67_p2, %p66_p1  ;;  %s54_s16 = ssub.s32 %s597_s12, %s748_s14 }
   0x8   : > { %p57_p5 = scmp.eq.s32.totalorder %s54_s16, 0  ;;  %p653_p6 = por %p98_p4, %p66_p1 }
   0x9   : > { %p468_p7 = scmp.ge.s32.totalorder %s601_s13, 3 }
   0xa   : > { %s658_s19 = scalar_select %p57_p5, %s589_s10, %s59_s17  }
   0xb   : > { %129 = sbr.rel (%p468_p7) target bundleno = 26 (0x1a), region = 20 }
  0x12   : > { %132 = sbr.rel (!%p68_p3) target bundleno = 26 (0x1a), region = 24  ;;  %s134_s20 = sand.u32 (%p68_p3), 1, %s589_s10  }
  0x13   : > { %s481_s21 = sshll.u32 (%p68_p3), %s597_s12, 5  ;;  %s469_s22 = sshll.u32 (%p68_p3), %s134_s20, 6 }
  0x14   : > { %s141_s25 = scalar_lea.vmem (%p68_p3), %s740_s1, %s481_s21  ;;  %s136_s26 = scalar_lea.vmem (%p68_p3), [#allocation2], %s469_s22 }
  0x15   : > { %v154_v0 = vld [vmem:[%s141_s25] sm:$0xff] (%p68_p3)  ;;  %v156_v1 = vld [vmem:[%s141_s25 + $0x8] sm:$0xff] (%p68_p3)  ;;  %v158_v2 = vld [vmem:[%s141_s25 + $0x10] sm:$0xff] (%p68_p3) }
  0x16   : > { %155 = vst [vmem:[%s136_s26] sm:$0xff] (%p68_p3), %v154_v0  ;;  %157 = vst [vmem:[%s136_s26 + $0x8] sm:$0xff] (%p68_p3), %v156_v1  ;;  %v160_v3 = vld [vmem:[%s141_s25 + $0x18] sm:$0xff] (%p68_p3)  ;;  %v162_v4 = vld [vmem:[%s141_s25 + $0x60] sm:$0xff] (%p68_p3) }
  0x17   : > { %159 = vst [vmem:[%s136_s26 + $0x10] sm:$0xff] (%p68_p3), %v158_v2  ;;  %v164_v5 = vld [vmem:[%s141_s25 + $0x68] sm:$0xff] (%p68_p3)  ;;  %161 = vst [vmem:[%s136_s26 + $0x18] sm:$0xff] (%p68_p3), %v160_v3  ;;  %v166_v6 = vld [vmem:[%s141_s25 + $0x70] sm:$0xff] (%p68_p3) }
  0x18   : > { %163 = vst [vmem:[%s136_s26 + $0x20] sm:$0xff] (%p68_p3), %v162_v4  ;;  %165 = vst [vmem:[%s136_s26 + $0x28] sm:$0xff] (%p68_p3), %v164_v5  ;;  %v168_v7 = vld [vmem:[%s141_s25 + $0x78] sm:$0xff] (%p68_p3) }
  0x19   : > { %167 = vst [vmem:[%s136_s26 + $0x30] sm:$0xff] %v166_v6  ;;  %169 = vst [vmem:[%s136_s26 + $0x38] sm:$0xff] %v168_v7 }
  0x1a PF: > { %p472_p8 = scmp.ge.s32.totalorder %s601_s13, 1  ;;  %p174_p9 = scmp.lt.s32.totalorder %s601_s13, 4 }
  0x1c   : > { %p175_p10 = pnand %p472_p8, %p174_p9 }
  0x1d   : > { %s181_s27 = sand.u32 (!%p175_p10), 1, %s585_s9   ;;  %p214_p11 = scmp.eq.s32.totalorder (!%p175_p10), %s593_s11, 1  ;;  %v229_v8 = vlaneseq (!%p175_p10)  ;;  %v475_v60 = vld.sshfl [vmem:[%s739_s0] sm:$0x33 pattern:$0x76325410] (!%p175_p10) }
  0x1e   : > { %178 = sbr.rel (%p175_p10) target bundleno = 80 (0x50), region = 47  ;;  %s670_s28 = sshll.u32 (!%p175_p10), %s181_s27, 6  ;;  %v293_v2 = vcombine.high (!%p175_p10), %v475_v60, %v475_v60 }
  0x1f   : > { %p217_p12 = scmp.eq.s32.totalorder (!%p175_p10), %s593_s11, 2  ;;  %s674_s29 = scalar_lea.vmem (!%p175_p10), [#allocation2], %s670_s28  ;;  %v230_v17 = vshrl.u32 (!%p175_p10), %v229_v8, 7 }
  0x20   : > { %v220_v9 = vld [vmem:[%s674_s29] sm:$0xff] (!%p175_p10)  ;;  %v221_v10 = vld [vmem:[%s674_s29 + $0x8] sm:$0xff] (!%p175_p10)  ;;  %v222_v26 = vld [vmem:[%s674_s29 + $0x10] sm:$0x1] (!%p175_p10)  ;;  %s689_s6 = scalar_lea.vmem (!%p175_p10), [#allocation3], %s670_s28 }
  0x21   : > { %v224_v11 = vld [vmem:[%s674_s29 + $0x20] sm:$0xff] (!%p175_p10)  ;;  %v237_v12 = vsub.f32 (!%p175_p10), 0.0, %v220_v9  ;;  %v238_v13 = vsub.f32 (!%p175_p10), 0.0, %v221_v10  ;;  %v225_v15 = vld [vmem:[%s674_s29 + $0x28] sm:$0xff] (!%p175_p10)  ;;  %v308_v18 = vmul.f32 (!%p175_p10), 1.442695, %v220_v9 }
  0x22   : > { %v241_v14 = vsub.f32 (!%p175_p10), 0.0, %v224_v11  ;;  %v242_v16 = vsub.f32 (!%p175_p10), 0.0, %v225_v15  ;;  %v310_v23 = vmul.f32 (!%p175_p10), 1.442695, %v221_v10  ;;  %v312_v24 = vmul.f32 (!%p175_p10), 1.442695, %v224_v11 }
  0x23   : > { %v245_v19 = vmul.f32 (!%p175_p10), 1.442695, %v237_v12  ;;  %v247_v20 = vmul.f32 (!%p175_p10), 1.442695, %v238_v13  ;;  %523 = vpow2.f32 (!%p175_p10), %v308_v18  ;;  %v314_v25 = vmul.f32 (!%p175_p10), 1.442695, %v225_v15 }
  0x24   : > { %v253_v21 = vmul.f32 (!%p175_p10), 1.442695, %v241_v14  ;;  %v255_v22 = vmul.f32 (!%p175_p10), 1.442695, %v242_v16  ;;  %vm231_vm0 = vcmp.eq.s32.totalorder (!%p175_p10), %v230_v17, 0  ;;  %v239_v29 = vsub.f32 (!%p175_p10), 0.0, %v222_v26 }
  0x25   : > { %s215_s30 = scalar_select %p214_p11, 4.0, 2.5  ;;  %525 = vpow2.f32 %v245_v19  ;;  %v223_v27 = vld [vmem:[%s674_s29 + $0x18] sm:$0x1]  ;;  %v226_v31 = vld [vmem:[%s674_s29 + $0x30] sm:$0x1] }
  0x26   : > { %s216_s3 = scalar_select %p214_p11, 7.5, 3.25  ;;  %527 = vpow2.f32 %v247_v20  ;;  %v240_v30 = vsub.f32 0.0, %v223_v27  ;;  %v227_v32 = vld [vmem:[%s674_s29 + $0x38] sm:$0x1]  ;;  %v243_v34 = vsub.f32 0.0, %v226_v31 }
  0x27   : > { %s750_s30 = smov (%p217_p12, %s215_s30), 8.25  ;;  %529 = vpow2.f32 %v253_v21  ;;  %v244_v35 = vsub.f32 0.0, %v227_v32  ;;  %v249_v37 = vmul.f32 1.442695, %v239_v29  ;;  %s482_s9 = sshll.u32 (%p653_p6), %s593_s11, 5 }
  0x28   : > { %s752_s3 = smov (%p217_p12, %s216_s3), 5.75  ;;  %s232_s4 = smul.f32 4.0, %s750_s30  ;;  %531 = vpow2.f32 %v255_v22  ;;  %v251_v38 = vmul.f32 1.442695, %v240_v30  ;;  %v257_v39 = vmul.f32 1.442695, %v243_v34 }
  0x29   : > { %s233_s5 = smul.f32 4.0, %s752_s3  ;;  %533 = vpow2.f32 %v310_v23  ;;  %v259_v41 = vmul.f32 1.442695, %v244_v35  ;;  %s346_s17 = scalar_lea.vmem (%p653_p6), %s741_s2, %s482_s9 }
  0x2a   : > { %v234_v28 = vstv %s232_s4  ;;  %535 = vpow2.f32 %v312_v24 }
  0x2b   : > { %v235_v33 = vstv %s233_s5  ;;  %537 = vpow2.f32 %v314_v25 }
  0x2c   : > { %v236_v36 = vsel %vm231_vm0, %v234_v28, %v235_v33  ;;  %539 = vpow2.f32 %v249_v37 }
  0x2d   : > { %v317_v40 = vrot.slane %v236_v36, 6  ;;  %541 = vpow2.f32 %v251_v38  ;;  %v524_v42 = vpop.eup %523 }
  0x2e   : > { %543 = vpow2.f32 %v257_v39 }
  0x2f   : > { %v526_v43 = vpop.eup %525  ;;  %v319_v44 = vmul.f32 %v524_v42, %v317_v40  ;;  %545 = vpow2.f32 %v259_v41 }
  0x30   : > { %v528_v45 = vpop.eup %527  ;;  %v261_v46 = vadd.f32 1.0, %v526_v43 }
  0x31   : > { %v530_v47 = vpop.eup %529  ;;  %v262_v48 = vadd.f32 1.0, %v528_v45  ;;  %323 = vst [vmem:[%s689_s6] sm:$0xc] %v319_v44 }
  0x32   : > { %v532_v49 = vpop.eup %531  ;;  %547 = vrcp.f32 %v261_v46  ;;  %v265_v50 = vadd.f32 1.0, %v530_v47 }
  0x33   : > { %v534_v51 = vpop.eup %533  ;;  %549 = vrcp.f32 %v262_v48  ;;  %v266_v52 = vadd.f32 1.0, %v532_v49 }
  0x34   : > { %v536_v53 = vpop.eup %535  ;;  %551 = vrcp.f32 %v265_v50  ;;  %v320_v54 = vmul.f32 %v534_v51, %v317_v40 }
  0x35   : > { %v538_v55 = vpop.eup %537  ;;  %553 = vrcp.f32 %v266_v52  ;;  %v321_v56 = vmul.f32 %v536_v53, %v317_v40 }
  0x36   : > { %v540_v57 = vpop.eup %539  ;;  %324 = vst [vmem:[%s689_s6 + $0x8] sm:$0xc] %v320_v54  ;;  %v322_v58 = vmul.f32 %v538_v55, %v317_v40 }
  0x37   : > { %v542_v59 = vpop.eup %541  ;;  %325 = vst [vmem:[%s689_s6 + $0x20] sm:$0xc] %v321_v56  ;;  %v263_v61 = vadd.f32 1.0, %v540_v57 }
  0x38   : > { %v544_v62 = vpop.eup %543  ;;  %326 = vst [vmem:[%s689_s6 + $0x28] sm:$0xc] %v322_v58  ;;  %v264_v63 = vadd.f32 1.0, %v542_v59 }
  0x39   : > { %v546_v0 = vpop.eup %545  ;;  %555 = vrcp.f32 %v263_v61  ;;  %v267_v1 = vadd.f32 1.0, %v544_v62 }
  0x3a   : > { %557 = vrcp.f32 %v264_v63  ;;  %v268_v3 = vadd.f32 1.0, %v546_v0 }
  0x3b   : > { %559 = vrcp.f32 %v267_v1 }
  0x3c   : > { %v548_v4 = vpop.eup %547  ;;  %561 = vrcp.f32 %v268_v3 }
  0x3d   : > { %v550_v5 = vpop.eup %549  ;;  %v296_v6 = vadd.f32 %v548_v4, %v475_v60  ;;  %327 = vst [vmem:[%s689_s6] sm:$0xf0] %v548_v4 }
  0x3e   : > { %v552_v7 = vpop.eup %551  ;;  %v297_v8 = vadd.f32 %v550_v5, %v293_v2  ;;  %328 = vst [vmem:[%s689_s6 + $0x8] sm:$0xf0] %v550_v5 }
  0x3f   : > { %v554_v9 = vpop.eup %553  ;;  %v300_v10 = vmul.f32 4.0, %v296_v6  ;;  %v298_v11 = vadd.f32 %v552_v7, %v475_v60  ;;  %331 = vst [vmem:[%s689_s6 + $0x20] sm:$0xf0] %v552_v7 }
  0x40   : > { %v301_v12 = vmul.f32 4.0, %v297_v8  ;;  %v299_v13 = vadd.f32 %v554_v9, %v293_v2  ;;  %332 = vst [vmem:[%s689_s6 + $0x28] sm:$0xf0] %v554_v9 }
  0x41   : > { %304 = vst [vmem:[%s689_s6] sm:$0x3] %v300_v10  ;;  %v302_v14 = vmul.f32 4.0, %v298_v11  ;;  %341 = sbr.rel (!%p653_p6) target bundleno = 80 (0x50), region = 55 }
  0x42   : > { %305 = vst [vmem:[%s689_s6 + $0x8] sm:$0x3] %v301_v12  ;;  %v303_v15 = vmul.f32 4.0, %v299_v13 }
  0x43   : > { %v556_v16 = vpop.eup %555  ;;  %306 = vst [vmem:[%s689_s6 + $0x20] sm:$0x3] %v302_v14 }
  0x44   : > { %v558_v17 = vpop.eup %557  ;;  %307 = vst [vmem:[%s689_s6 + $0x28] sm:$0x3] %v303_v15  ;;  %329 = vst [vmem:[%s689_s6 + $0x10] sm:$0x1] %v556_v16 }
  0x45   : > { %v560_v18 = vpop.eup %559  ;;  %330 = vst [vmem:[%s689_s6 + $0x18] sm:$0x1] %v558_v17 }
  0x46   : > { %v562_v19 = vpop.eup %561  ;;  %333 = vst [vmem:[%s689_s6 + $0x30] sm:$0x1] %v560_v18 }
  0x47   : > { %334 = vst [vmem:[%s689_s6 + $0x38] sm:$0x1] %v562_v19 }
  0x48   : > { %v359_v20 = vld [vmem:[%s689_s6] sm:$0xff] }
  0x49   : > { %v361_v21 = vld [vmem:[%s689_s6 + $0x8] sm:$0xff]  ;;  %360 = vst [vmem:[%s346_s17] sm:$0xff] %v359_v20 }
  0x4a   : > { %v367_v24 = vld [vmem:[%s689_s6 + $0x20] sm:$0xff]  ;;  %362 = vst [vmem:[%s346_s17 + $0x8] sm:$0xff] %v361_v21 }
  0x4b   : > { %v363_v22 = vld [vmem:[%s689_s6 + $0x10] sm:$0xff]  ;;  %v369_v25 = vld [vmem:[%s689_s6 + $0x28] sm:$0xff]  ;;  %368 = vst [vmem:[%s346_s17 + $0x60] sm:$0xff] %v367_v24 }
  0x4c   : > { %v365_v23 = vld [vmem:[%s689_s6 + $0x18] sm:$0xff]  ;;  %364 = vst [vmem:[%s346_s17 + $0x10] sm:$0xff] %v363_v22  ;;  %370 = vst [vmem:[%s346_s17 + $0x68] sm:$0xff] %v369_v25 }
  0x4d   : > { %366 = vst [vmem:[%s346_s17 + $0x18] sm:$0xff] %v365_v23  ;;  %v371_v26 = vld [vmem:[%s689_s6 + $0x30] sm:$0xff] }
  0x4e   : > { %v373_v27 = vld [vmem:[%s689_s6 + $0x38] sm:$0xff]  ;;  %372 = vst [vmem:[%s346_s17 + $0x70] sm:$0xff] %v371_v26 }
  0x4f   : > { %374 = vst [vmem:[%s346_s17 + $0x78] sm:$0xff] %v373_v27 }
  0x50 PF: > { %s12_s13 = sadd.s32 1, %s601_s13   ;;  %s743_s9 = smov %s589_s10 }
  0x51   : > { %p9_p13 = scmp.ge.s32.totalorder %s12_s13, 5   ;;  %s744_s10 = smov %s658_s19 }
  0x52   : > { %s745_s11 = smov %s597_s12  ;;  %s746_s12 = smov %s748_s14 }
  0x53   :  { %11 = sbr.rel (!%p9_p13) target bundleno = 3 (0x3), region = 112 }

</bundles_post_ra>
